<compile_context>
chip_gen: v5e
topology: v5e:2x2
jax: 0.10.0
libtpu: 0.0.40
codegen_flags: <defaults>
</compile_context>

<pallas_src>
import jax
import jax.numpy as jnp
from jax.experimental import pallas as pl
from jax.experimental.pallas import tpu as pltpu


def _embedding_onehot_kernel(idx_ref, emb_ref, out_ref):
    # idx_ref: (TB, 1) int32 — token indices for this block
    # emb_ref: (V, D)        — whole embedding table, VMEM-resident
    # out_ref: (TB, D)       — gathered embedding rows
    tb = idx_ref.shape[0]
    v = emb_ref.shape[0]
    vocab_iota = jax.lax.broadcasted_iota(jnp.int32, (tb, v), 1)      # (TB, V)
    onehot = (idx_ref[...] == vocab_iota).astype(emb_ref.dtype)       # (TB, V)
    out_ref[...] = jnp.dot(
        onehot, emb_ref[...], preferred_element_type=jnp.float32
    ).astype(out_ref.dtype)


def var_embedding(indices, embedding_table, *, token_block=256):
    """Equivalent of VarEmbeddingCuda.forward: embedding_table[indices]."""
    B, S = indices.shape
    V, D = embedding_table.shape
    n = B * S
    flat_idx = indices.reshape(n).astype(jnp.int32)   # keep indices 32-bit

    # Sublane-dense token block: multiple of 8 (f32), sized to the MXU height
    # for large n, shrunk (but still a multiple of 8) for tiny inputs.
    if n >= token_block:
        tb = token_block
    else:
        tb = max(8, ((n + 7) // 8) * 8)
    padded_n = ((n + tb - 1) // tb) * tb
    if padded_n != n:
        flat_idx = jnp.pad(flat_idx, (0, padded_n - n))   # pad tokens -> row 0
    idx_col = flat_idx.reshape(padded_n, 1)
    num_blocks = padded_n // tb

    out_flat = pl.pallas_call(
        _embedding_onehot_kernel,
        out_shape=jax.ShapeDtypeStruct((padded_n, D), embedding_table.dtype),
        grid=(num_blocks,),
        in_specs=[
            # (TB, 1) slab of indices per step.
            pl.BlockSpec((tb, 1), lambda i: (i, 0)),
            # Whole table, same block every step -> fetched once, VMEM-resident.
            pl.BlockSpec((V, D), lambda i: (0, 0)),
        ],
        out_specs=pl.BlockSpec((tb, D), lambda i: (i, 0)),
        compiler_params=pltpu.CompilerParams(
            dimension_semantics=("parallel",)),
    )(idx_col, embedding_table)

    return out_flat[:n].reshape(B, S, D)


if __name__ == "__main__":
    # Deterministic synthetic parameters / inputs (no checkpoint loading).
    key = jax.random.PRNGKey(0)
    k_emb, k_idx, k_idx2 = jax.random.split(key, 3)

    vocab_size = 32
    embedding_size = 128
    B, S = 2, 8

    pretrained_embedding = jax.random.normal(
        k_emb, (vocab_size, embedding_size), dtype=jnp.float32)
    indices = jax.random.randint(
        k_idx, (B, S), minval=0, maxval=vocab_size, dtype=jnp.int32)

    out = var_embedding(indices, pretrained_embedding)
    out = jax.block_until_ready(out)

    ref = jnp.take(pretrained_embedding, indices, axis=0)
    assert out.shape == (B, S, embedding_size)
    assert jnp.allclose(out, ref), "Pallas embedding gather mismatch (small)"

    # Second check: exercises the multi-block + padding path (n not a multiple
    # of the token block).
    B2, S2 = 4, 100
    indices2 = jax.random.randint(
        k_idx2, (B2, S2), minval=0, maxval=vocab_size, dtype=jnp.int32)
    out2 = jax.block_until_ready(var_embedding(indices2, pretrained_embedding))
    ref2 = jnp.take(pretrained_embedding, indices2, axis=0)
    assert out2.shape == (B2, S2, embedding_size)
    assert jnp.allclose(out2, ref2), "Pallas embedding gather mismatch (padded)"

    print("KERNEL_OK")
</pallas_src>

<mosaic_0001>
module attributes {stable_mosaic.version = 11 : i64} {
  func.func @_embedding_onehot_kernel(%arg0: i32, %arg1: memref<16x1xi32, #tpu.memory_space<vmem>>, %arg2: memref<32x128xf32, #tpu.memory_space<vmem>>, %arg3: memref<16x128xf32, #tpu.memory_space<vmem>>) attributes {dimension_semantics = [#tpu.dimension_semantics<parallel>], iteration_bounds = array<i64: 1>, scalar_prefetch = 0 : i64, scratch_operands = 0 : i64, tpu.core_type = #tpu.core_type<tc>, window_params = [{transform_indices = @transform_0, window_bounds = array<i64: 16, 1>}, {pipeline_mode = #tpu.pipeline_mode<synchronous>, transform_indices = @transform_1, window_bounds = array<i64: 32, 128>}, {transform_indices = @transform_2, window_bounds = array<i64: 16, 128>}]} {
    %0 = tpu.iota {dimensions = array<i32: 1>} : vector<16x32xi32>
    %c0 = arith.constant 0 : index
    %c0_0 = arith.constant 0 : index
    %1 = vector.load %arg1[%c0, %c0_0] : memref<16x1xi32, #tpu.memory_space<vmem>>, vector<16x1xi32>
    %2 = vector.broadcast %1 : vector<16x1xi32> to vector<16x32xi32>
    %3 = arith.cmpi eq, %2, %0 : vector<16x32xi32>
    %4 = arith.extui %3 : vector<16x32xi1> to vector<16x32xi32>
    %5 = arith.sitofp %4 : vector<16x32xi32> to vector<16x32xf32>
    %c0_1 = arith.constant 0 : index
    %c0_2 = arith.constant 0 : index
    %6 = vector.load %arg2[%c0_1, %c0_2] : memref<32x128xf32, #tpu.memory_space<vmem>>, vector<32x128xf32>
    %cst = arith.constant dense<0.000000e+00> : vector<16x128xf32>
    %7 = tpu.matmul %5, %6, %cst {dimension_numbers = #tpu.dot_dimension_numbers<[1], [0], [0], [1], [0, 0, 1, 1], [], []>} : vector<16x32xf32>, vector<32x128xf32>, vector<16x128xf32> -> vector<16x128xf32>
    %c0_3 = arith.constant 0 : index
    %c0_4 = arith.constant 0 : index
    %8 = vector.load %arg3[%c0_3, %c0_4] : memref<16x128xf32, #tpu.memory_space<vmem>>, vector<16x128xf32>
    tpu.vector_store %arg3[%c0_3, %c0_4], %7 {strides = array<i32>} : memref<16x128xf32, #tpu.memory_space<vmem>>, vector<16x128xf32>,
    return
  }
  func.func @transform_0(%arg0: i32) -> (i32, i32) {
    %c0_i32 = arith.constant 0 : i32
    %c0_i32_0 = arith.constant 0 : i32
    return %arg0, %c0_i32 : i32, i32
  }
  func.func @transform_1(%arg0: i32) -> (i32, i32) {
    %c0_i32 = arith.constant 0 : i32
    %c0_i32_0 = arith.constant 0 : i32
    %c0_i32_1 = arith.constant 0 : i32
    return %c0_i32, %c0_i32_0 : i32, i32
  }
  func.func @transform_2(%arg0: i32) -> (i32, i32) {
    %c0_i32 = arith.constant 0 : i32
    %c0_i32_0 = arith.constant 0 : i32
    return %arg0, %c0_i32 : i32, i32
  }
}

</mosaic_0001>

<bundles_post_ra>
// kernel: tpu_custom_call.1
= control target key start
LH: loop header
LB: loop body
LE: loop exit
PB: predicated region body
PF: predicated region fallthrough
CT: control target
= control target key end

     0   :  { %7 = vsyncpa [#allocation3], 0  ;;  %s205_s0 = inlined_call_operand.vmem [shape: s32[16,1], index: 0, kind: input, shape index: {}]   ;;  %s206_s1 = inlined_call_operand.hbm [shape: f32[32,128], index: 1, kind: input, shape index: {}]   ;;  %s207_s2 = inlined_call_operand.hbm [shape: f32[16,128], index: 2, kind: output, shape index: {}]  }
   0x1   :  { %8 = vsyncpa [#allocation4], 0  ;;  %s15_s11 = sshll.u32 %s206_s1, 4  ;;  %s166_s12 = smov [#allocation2]   ;;  %s16_s11 = int_to_ptr.hbm [resolvable:$true] %s15_s11 }
   0x2   :  { %s17_s13 = sshll.u32 %s166_s12, 4  ;;  %s167_s14 = smov 128   ;;  %s18_s13 = int_to_ptr.vmem [resolvable:$true] %s17_s13 }
   0x3   :  { %s168_s15 = smov 8  }
   0x4   :  { %23 = dma.hbm_to_vmem [thread:$0]  %s16_s11, 512, %s18_s13, [#allocation3], %s167_s14, %s167_s14, %s168_s15  }
   0x5   :  { %162 = dma.done.wait [#allocation3], 512  }
   0x6   :  { %163 = vsyncadd [#allocation3], 4294966784  ;;  %v169_v0 = vmov 0   ;;  %v30_v1 = vld [vmem:[%s205_s0] sm:$0xff]  ;;  %v47_v2 = vld [vmem:[#allocation2 + $0x18] sm:$0xff]  ;;  %v28_v7 = vlaneseq  ;;  %vm48_vm0 = vcmask 261120  }
   0x7   :  { %113 = vset.pattern.permute.xlu0 %v169_v0  ;;  %67 = vmatpush.msra.mxu0 %v47_v2  ;;  %v46_v3 = vld [vmem:[#allocation2 + $0x10] sm:$0xff]  ;;  %v45_v4 = vld [vmem:[#allocation2 + $0x8] sm:$0xff]  ;;  %v44_v6 = vld [vmem:[#allocation2] sm:$0xff]  ;;  %v170_v10 = vmov 0.0   ;;  %s86_s22 = sshll.u32 %s207_s2, 4  ;;  %s87_s22 = int_to_ptr.hbm [resolvable:$true] %s86_s22 }
   0x8   :  { %33 = vperm.xlu0 %113, %v30_v1   ;;  %103 = vmatpush.msra.mxu1 %v47_v2  ;;  %v31_v5 = vld [vmem:[%s205_s0 + $0x8] sm:$0xff]  ;;  %v29_v8 = vand.u32 127, %v28_v7  ;;  %s171_s0 = smov [#allocation5]  }
   0x9   :  { %68 = vmatpush.msra.mxu0 %v46_v3  ;;  %s84_s19 = sshll.u32 %s171_s0, 4  ;;  %s85_s19 = int_to_ptr.vmem [resolvable:$true] %s84_s19 }
   0xa   :  { %104 = vmatpush.msra.mxu1 %v46_v3 }
   0xb   :  { %69 = vmatpush.msra.mxu0 %v45_v4 }
   0xc   :  { %105 = vmatpush.msra.mxu1 %v45_v4 }
   0xd   :  { %70 = vmatpush.msra.mxu0 %v44_v6 }
   0xe   :  { %106 = vmatpush.msra.mxu1 %v44_v6 }
  0x10   :  { %36 = vperm.xlu0 %113, %v31_v5  }
  0x7a   :  { %v34_v9 = vpop.permute.xlu0 %33 }
  0x7b   :  { %vm38_vm1 = vcmp.eq.s32.totalorder %v34_v9, %v29_v8 }
  0x7c   :  { %v99_v11 = vsel %vm38_vm1, 1.0, %v170_v10 }
  0x7d   :  { %101 = vmatmul.msk.f32.vlgmr.msra.gmra.mxu0 %vm48_vm0, %v99_v11 }
  0x82   :  { %v37_v12 = vpop.permute.xlu0 %36 }
  0x83   :  { %vm39_vm2 = vcmp.eq.s32.totalorder %v37_v12, %v29_v8 }
  0x84   :  { %v100_v13 = vsel %vm39_vm2, 1.0, %v170_v10 }
  0x85   :  { %102 = vmatmul.msk.f32.vlgmr.msra.gmra.mxu1 %vm48_vm0, %v100_v13 }
  0xfa   :  { %v72_v14 = vpop.f32.mrf.mxu0 }
  0xfb   :  { %78 = vst [vmem:[#allocation5] sm:$0xff] %v72_v14 }
 0x102   :  { %v75_v15 = vpop.f32.mrf.mxu1 }
 0x103   :  { %79 = vst [vmem:[#allocation5 + $0x8] sm:$0xff] %v75_v15 }
 0x104   :  { %92 = dma.vmem_to_hbm [thread:$0]  %s85_s19, 256, %s87_s22, [#allocation4], %s167_s14, %s167_s14, %s168_s15  }
 0x105   :  { %164 = dma.done.wait [#allocation4], 256  }
 0x106   :  { %165 = vsyncadd [#allocation4], 4294967040 }
 0x107   :  { %97 = vsyncpa [#allocation3], 1 }
 0x108   :  { %98 = vsyncpa [#allocation4], 1 }

</bundles_post_ra>
